<compile_context>
chip_gen: v7x
topology: tpu7x:2x2x1
jax: 0.10.0
libtpu: 0.0.40
codegen_flags: <defaults>
</compile_context>

<pallas_src>
import functools

import jax
import jax.numpy as jnp
from jax import lax
from jax.experimental import pallas as pl
from jax.experimental.pallas import tpu as pltpu

_CHUNK = 512  # compute sub-chunk (columns / participants) inside one DMA tile


def _team_assignment_kernel(xt_ref, w1t_ref, b1t_ref, w2t_ref, b2t_ref,
                            w3t_ref, b3t_ref, out_ref, *, num_chunks):
    """Transposed pipeline: columns = participants (lane axis), rows = features."""

    def body(c, carry):
        start = pl.multiple_of(c * _CHUNK, _CHUNK)
        x = xt_ref[:, pl.ds(start, _CHUNK)]                 # (3, C) f32

        # ---- Layer 1: Linear(3,32) + ReLU as 3 broadcast FMAs on the VPU (f32) ----
        h1 = (w1t_ref[:, 0:1] * x[0:1, :]
              + w1t_ref[:, 1:2] * x[1:2, :]
              + w1t_ref[:, 2:3] * x[2:3, :])                 # (32, C)
        h1 = jnp.maximum(h1 + b1t_ref[...], 0.0)

        # ---- Layer 2: Linear(32,64) + ReLU on the MXU (bf16 in, f32 accumulate) ----
        h2 = jnp.dot(w2t_ref[...], h1.astype(jnp.bfloat16),
                     preferred_element_type=jnp.float32)     # (64, C)
        h2 = jnp.maximum(h2 + b2t_ref[...], 0.0)

        # ---- Layer 3: Linear(64,T) + Softmax over teams (axis 0), f32 ----
        logits = jnp.dot(w3t_ref[...], h2.astype(jnp.bfloat16),
                         preferred_element_type=jnp.float32)  # (T, C)
        logits = logits + b3t_ref[...]

        m = jnp.max(logits, axis=0, keepdims=True)            # (1, C)
        e = jnp.exp(logits - m)
        denom = jnp.sum(e, axis=0, keepdims=True)
        out_ref[:, pl.ds(start, _CHUNK)] = e / denom           # exact divide
        return carry

    lax.fori_loop(0, num_chunks, body, 0)


def team_assignment_forward(x, params, *, tile_n=32768):
    """x: (N, 3) float32 participant features. params: dict of f32 weights (in,out)
    and biases (1,out). Returns (N, num_teams) float32 softmax probabilities."""
    w1 = params["w1"].astype(jnp.float32)
    b1 = params["b1"].astype(jnp.float32)
    w2 = params["w2"].astype(jnp.float32)
    b2 = params["b2"].astype(jnp.float32)
    w3 = params["w3"].astype(jnp.float32)
    b3 = params["b3"].astype(jnp.float32)

    n = x.shape[0]
    num_teams = w3.shape[1]

    # Lane-dense transposed layouts (layout plumbing in the wrapper; the x / out
    # streams are tiny per row so the transpose passes are cheap).
    xt = x.astype(jnp.float32).T            # (3, N)   f32
    w1t = w1.T                              # (32, 3)  f32 (VPU layer 1)
    b1t = b1.T                              # (32, 1)
    w2t = w2.T.astype(jnp.bfloat16)         # (64, 32) bf16 (MXU, resident)
    b2t = b2.T                              # (64, 1)
    w3t = w3.T.astype(jnp.bfloat16)         # (T, 64)  bf16 (MXU, resident)
    b3t = b3.T                              # (T, 1)

    # DMA tile along N: multiple of _CHUNK (hence of 128). No wrapper-side pad:
    # Pallas handles the ragged last block (OOB output lanes are not written back,
    # OOB input lanes only affect their own -- discarded -- columns).
    tile_n = max(_CHUNK, (tile_n // _CHUNK) * _CHUNK)
    n_round = pl.cdiv(n, _CHUNK) * _CHUNK
    tile = min(tile_n, n_round)
    grid = (pl.cdiv(n, tile),)
    num_chunks = tile // _CHUNK

    resident = lambda i: (0, 0)  # same block every step -> stays resident in VMEM

    kernel = functools.partial(_team_assignment_kernel, num_chunks=num_chunks)

    out_t = pl.pallas_call(
        kernel,
        out_shape=jax.ShapeDtypeStruct((num_teams, n), jnp.float32),
        grid=grid,
        in_specs=[
            pl.BlockSpec((3, tile), lambda i: (0, i)),   # x^T: streamed per tile
            pl.BlockSpec(w1t.shape, resident),           # (32, 3)
            pl.BlockSpec(b1t.shape, resident),           # (32, 1)
            pl.BlockSpec(w2t.shape, resident),           # (64, 32)
            pl.BlockSpec(b2t.shape, resident),           # (64, 1)
            pl.BlockSpec(w3t.shape, resident),           # (T, 64)
            pl.BlockSpec(b3t.shape, resident),           # (T, 1)
        ],
        out_specs=pl.BlockSpec((num_teams, tile), lambda i: (0, i)),
        compiler_params=pltpu.CompilerParams(
            # "parallel" is harmless everywhere; on v7x, pltpu.CORE_PARALLEL could
            # be evaluated for explicit 2-TensorCore sharding of the N axis.
            dimension_semantics=("parallel",),
            vmem_limit_bytes=32 * 1024 * 1024,
        ),
    )(xt, w1t, b1t, w2t, b2t, w3t, b3t)

    return out_t.T  # (N, T)


def init_params(key, num_teams):
    """Deterministic synthetic init (PyTorch-style uniform fan-in scaling)."""
    ks = jax.random.split(key, 6)

    def lin(kw, kb, fan_in, fan_out):
        bound = 1.0 / jnp.sqrt(fan_in)
        w = jax.random.uniform(kw, (fan_in, fan_out), jnp.float32, -bound, bound)
        b = jax.random.uniform(kb, (1, fan_out), jnp.float32, -bound, bound)
        return w, b

    w1, b1 = lin(ks[0], ks[1], 3, 32)
    w2, b2 = lin(ks[2], ks[3], 32, 64)
    w3, b3 = lin(ks[4], ks[5], 64, num_teams)
    return dict(w1=w1, b1=b1, w2=w2, b2=b2, w3=w3, b3=b3)


def _reference_forward_f32(x, p):
    """Pure-f32 PyTorch-equivalent forward."""
    h = jnp.maximum(x @ p["w1"] + p["b1"], 0.0)
    h = jnp.maximum(h @ p["w2"] + p["b2"], 0.0)
    logits = h @ p["w3"] + p["b3"]
    return jax.nn.softmax(logits, axis=1)


def _reference_forward_matched(x, p):
    """Reference mimicking the kernel's precision path (f32 layer-1, bf16 MXU dots)."""
    h1 = (x[:, 0:1] * p["w1"][0:1, :]
          + x[:, 1:2] * p["w1"][1:2, :]
          + x[:, 2:3] * p["w1"][2:3, :])
    h1 = jnp.maximum(h1 + p["b1"], 0.0)
    h2 = jnp.dot(h1.astype(jnp.bfloat16), p["w2"].astype(jnp.bfloat16),
                 preferred_element_type=jnp.float32)
    h2 = jnp.maximum(h2 + p["b2"], 0.0)
    logits = jnp.dot(h2.astype(jnp.bfloat16), p["w3"].astype(jnp.bfloat16),
                     preferred_element_type=jnp.float32) + p["b3"]
    return jax.nn.softmax(logits, axis=1)


if __name__ == "__main__":
    num_participants = 8
    num_teams = 4

    key = jax.random.PRNGKey(0)
    k_x, k_p = jax.random.split(key)

    # x: (num_participants, 3) participant features
    x = jax.random.normal(k_x, (num_participants, 3), dtype=jnp.float32)
    params = init_params(k_p, num_teams)

    out = jax.block_until_ready(team_assignment_forward(x, params))

    assert out.shape == (num_participants, num_teams)
    # rows of the softmax output sum to 1
    assert jnp.allclose(jnp.sum(out, axis=1), 1.0, atol=1e-5)
    # matched-precision reference (same bf16 MXU casts as the kernel): tight check
    ref_matched = _reference_forward_matched(x, params)
    assert jnp.allclose(out, ref_matched, atol=1e-4, rtol=1e-4), "mismatch vs matched reference"
    # full-f32 PyTorch-semantics reference: loose check (bf16 MXU weights by design)
    ref_f32 = _reference_forward_f32(x, params)
    assert jnp.allclose(out, ref_f32, atol=2e-2, rtol=2e-2), "mismatch vs f32 reference"

    print("KERNEL_OK")
</pallas_src>

<mosaic_0001>
module attributes {stable_mosaic.version = 11 : i64} {
  func.func @_team_assignment_kernel(%arg0: i32, %arg1: memref<3x512xf32, #tpu.memory_space<vmem>>, %arg2: memref<32x3xf32, #tpu.memory_space<vmem>>, %arg3: memref<32x1xf32, #tpu.memory_space<vmem>>, %arg4: memref<64x32xbf16, #tpu.memory_space<vmem>>, %arg5: memref<64x1xf32, #tpu.memory_space<vmem>>, %arg6: memref<4x64xbf16, #tpu.memory_space<vmem>>, %arg7: memref<4x1xf32, #tpu.memory_space<vmem>>, %arg8: memref<4x512xf32, #tpu.memory_space<vmem>>) attributes {dimension_semantics = [#tpu.dimension_semantics<parallel>], iteration_bounds = array<i64: 1>, scalar_prefetch = 0 : i64, scratch_operands = 0 : i64, tpu.core_type = #tpu.core_type<tc>, window_params = [{transform_indices = @transform_0, window_bounds = array<i64: 3, 512>}, {pipeline_mode = #tpu.pipeline_mode<synchronous>, transform_indices = @transform_1, window_bounds = array<i64: 32, 3>}, {pipeline_mode = #tpu.pipeline_mode<synchronous>, transform_indices = @transform_2, window_bounds = array<i64: 32, 1>}, {pipeline_mode = #tpu.pipeline_mode<synchronous>, transform_indices = @transform_3, window_bounds = array<i64: 64, 32>}, {pipeline_mode = #tpu.pipeline_mode<synchronous>, transform_indices = @transform_4, window_bounds = array<i64: 64, 1>}, {pipeline_mode = #tpu.pipeline_mode<synchronous>, transform_indices = @transform_5, window_bounds = array<i64: 4, 64>}, {pipeline_mode = #tpu.pipeline_mode<synchronous>, transform_indices = @transform_6, window_bounds = array<i64: 4, 1>}, {transform_indices = @transform_7, window_bounds = array<i64: 4, 512>}]} {
    %c0_i32 = arith.constant 0 : i32
    %c512_i32 = arith.constant 512 : i32
    %0 = arith.muli %c0_i32, %c512_i32 : i32
    %1 = tpu.assume_multiple %0, 512 : i32
    %c0 = arith.constant 0 : index
    %2 = arith.index_cast %1 : i32 to index
    %3 = vector.load %arg1[%c0, %2] : memref<3x512xf32, #tpu.memory_space<vmem>>, vector<3x512xf32>
    %c0_0 = arith.constant 0 : index
    %c0_1 = arith.constant 0 : index
    %4 = vector.load %arg2[%c0_0, %c0_1] : memref<32x3xf32, #tpu.memory_space<vmem>>, vector<32x1xf32>
    %5 = vector.extract_strided_slice %3 {offsets = [0, 0], sizes = [1, 512], strides = [1, 1]} : vector<3x512xf32> to vector<1x512xf32>
    %6 = vector.broadcast %4 : vector<32x1xf32> to vector<32x512xf32>
    %7 = vector.broadcast %5 : vector<1x512xf32> to vector<32x512xf32>
    %8 = arith.mulf %6, %7 : vector<32x512xf32>
    %c0_2 = arith.constant 0 : index
    %c1 = arith.constant 1 : index
    %9 = vector.load %arg2[%c0_2, %c1] : memref<32x3xf32, #tpu.memory_space<vmem>>, vector<32x1xf32>
    %10 = vector.extract_strided_slice %3 {offsets = [1, 0], sizes = [1, 512], strides = [1, 1]} : vector<3x512xf32> to vector<1x512xf32>
    %11 = vector.broadcast %9 : vector<32x1xf32> to vector<32x512xf32>
    %12 = vector.broadcast %10 : vector<1x512xf32> to vector<32x512xf32>
    %13 = arith.mulf %11, %12 : vector<32x512xf32>
    %14 = arith.addf %8, %13 : vector<32x512xf32>
    %c0_3 = arith.constant 0 : index
    %c2 = arith.constant 2 : index
    %15 = vector.load %arg2[%c0_3, %c2] : memref<32x3xf32, #tpu.memory_space<vmem>>, vector<32x1xf32>
    %16 = vector.extract_strided_slice %3 {offsets = [2, 0], sizes = [1, 512], strides = [1, 1]} : vector<3x512xf32> to vector<1x512xf32>
    %17 = vector.broadcast %15 : vector<32x1xf32> to vector<32x512xf32>
    %18 = vector.broadcast %16 : vector<1x512xf32> to vector<32x512xf32>
    %19 = arith.mulf %17, %18 : vector<32x512xf32>
    %20 = arith.addf %14, %19 : vector<32x512xf32>
    %c0_4 = arith.constant 0 : index
    %c0_5 = arith.constant 0 : index
    %21 = vector.load %arg3[%c0_4, %c0_5] : memref<32x1xf32, #tpu.memory_space<vmem>>, vector<32x1xf32>
    %22 = vector.broadcast %21 : vector<32x1xf32> to vector<32x512xf32>
    %23 = arith.addf %20, %22 : vector<32x512xf32>
    %cst = arith.constant 0.000000e+00 : f32
    %24 = vector.broadcast %cst : f32 to vector<32x512xf32>
    %25 = arith.maximumf %23, %24 : vector<32x512xf32>
    %c0_6 = arith.constant 0 : index
    %c0_7 = arith.constant 0 : index
    %26 = vector.load %arg4[%c0_6, %c0_7] : memref<64x32xbf16, #tpu.memory_space<vmem>>, vector<64x32xbf16>
    %27 = arith.truncf %25 : vector<32x512xf32> to vector<32x512xbf16>
    %cst_8 = arith.constant dense<0.000000e+00> : vector<64x512xf32>
    %28 = tpu.matmul %26, %27, %cst_8 {dimension_numbers = #tpu.dot_dimension_numbers<[1], [0], [0], [1], [0, 0, 1, 1], [], []>} : vector<64x32xbf16>, vector<32x512xbf16>, vector<64x512xf32> -> vector<64x512xf32>
    %c0_9 = arith.constant 0 : index
    %c0_10 = arith.constant 0 : index
    %29 = vector.load %arg5[%c0_9, %c0_10] : memref<64x1xf32, #tpu.memory_space<vmem>>, vector<64x1xf32>
    %30 = vector.broadcast %29 : vector<64x1xf32> to vector<64x512xf32>
    %31 = arith.addf %28, %30 : vector<64x512xf32>
    %cst_11 = arith.constant 0.000000e+00 : f32
    %32 = vector.broadcast %cst_11 : f32 to vector<64x512xf32>
    %33 = arith.maximumf %31, %32 : vector<64x512xf32>
    %c0_12 = arith.constant 0 : index
    %c0_13 = arith.constant 0 : index
    %34 = vector.load %arg6[%c0_12, %c0_13] : memref<4x64xbf16, #tpu.memory_space<vmem>>, vector<4x64xbf16>
    %35 = arith.truncf %33 : vector<64x512xf32> to vector<64x512xbf16>
    %cst_14 = arith.constant dense<0.000000e+00> : vector<4x512xf32>
    %36 = tpu.matmul %34, %35, %cst_14 {dimension_numbers = #tpu.dot_dimension_numbers<[1], [0], [0], [1], [0, 0, 1, 1], [], []>} : vector<4x64xbf16>, vector<64x512xbf16>, vector<4x512xf32> -> vector<4x512xf32>
    %c0_15 = arith.constant 0 : index
    %c0_16 = arith.constant 0 : index
    %37 = vector.load %arg7[%c0_15, %c0_16] : memref<4x1xf32, #tpu.memory_space<vmem>>, vector<4x1xf32>
    %38 = vector.broadcast %37 : vector<4x1xf32> to vector<4x512xf32>
    %39 = arith.addf %36, %38 : vector<4x512xf32>
    %cst_17 = arith.constant dense<0xFF800000> : vector<512xf32>
    %40 = vector.multi_reduction <maximumf>, %39, %cst_17 [0] : vector<4x512xf32> to vector<512xf32>
    %41 = vector.shape_cast %40 : vector<512xf32> to vector<1x512xf32>
    %42 = vector.broadcast %41 : vector<1x512xf32> to vector<4x512xf32>
    %43 = arith.subf %39, %42 : vector<4x512xf32>
    %44 = math.exp %43 : vector<4x512xf32>
    %cst_18 = arith.constant dense<0.000000e+00> : vector<512xf32>
    %45 = vector.multi_reduction <add>, %44, %cst_18 [0] : vector<4x512xf32> to vector<512xf32>
    %46 = vector.shape_cast %45 : vector<512xf32> to vector<1x512xf32>
    %47 = vector.broadcast %46 : vector<1x512xf32> to vector<4x512xf32>
    %48 = arith.divf %44, %47 : vector<4x512xf32>
    %c0_19 = arith.constant 0 : index
    %49 = arith.index_cast %1 : i32 to index
    %50 = vector.load %arg8[%c0_19, %49] : memref<4x512xf32, #tpu.memory_space<vmem>>, vector<4x512xf32>
    tpu.vector_store %arg8[%c0_19, %49], %48 {strides = array<i32>} : memref<4x512xf32, #tpu.memory_space<vmem>>, vector<4x512xf32>,
    %c1_i32 = arith.constant 1 : i32
    return
  }
  func.func @transform_0(%arg0: i32) -> (i32, i32) {
    %c0_i32 = arith.constant 0 : i32
    %c0_i32_0 = arith.constant 0 : i32
    return %c0_i32, %arg0 : i32, i32
  }
  func.func @transform_1(%arg0: i32) -> (i32, i32) {
    %c0_i32 = arith.constant 0 : i32
    %c0_i32_0 = arith.constant 0 : i32
    %c0_i32_1 = arith.constant 0 : i32
    return %c0_i32, %c0_i32_0 : i32, i32
  }
  func.func @transform_2(%arg0: i32) -> (i32, i32) {
    %c0_i32 = arith.constant 0 : i32
    %c0_i32_0 = arith.constant 0 : i32
    %c0_i32_1 = arith.constant 0 : i32
    return %c0_i32, %c0_i32_0 : i32, i32
  }
  func.func @transform_3(%arg0: i32) -> (i32, i32) {
    %c0_i32 = arith.constant 0 : i32
    %c0_i32_0 = arith.constant 0 : i32
    %c0_i32_1 = arith.constant 0 : i32
    return %c0_i32, %c0_i32_0 : i32, i32
  }
  func.func @transform_4(%arg0: i32) -> (i32, i32) {
    %c0_i32 = arith.constant 0 : i32
    %c0_i32_0 = arith.constant 0 : i32
    %c0_i32_1 = arith.constant 0 : i32
    return %c0_i32, %c0_i32_0 : i32, i32
  }
  func.func @transform_5(%arg0: i32) -> (i32, i32) {
    %c0_i32 = arith.constant 0 : i32
    %c0_i32_0 = arith.constant 0 : i32
    %c0_i32_1 = arith.constant 0 : i32
    return %c0_i32, %c0_i32_0 : i32, i32
  }
  func.func @transform_6(%arg0: i32) -> (i32, i32) {
    %c0_i32 = arith.constant 0 : i32
    %c0_i32_0 = arith.constant 0 : i32
    %c0_i32_1 = arith.constant 0 : i32
    return %c0_i32, %c0_i32_0 : i32, i32
  }
  func.func @transform_7(%arg0: i32) -> (i32, i32) {
    %c0_i32 = arith.constant 0 : i32
    %c0_i32_0 = arith.constant 0 : i32
    return %c0_i32, %arg0 : i32, i32
  }
}

</mosaic_0001>

<bundles_post_ra>
// kernel: tpu_custom_call.1
= control target key start
LH: loop header
LB: loop body
LE: loop exit
PB: predicated region body
PF: predicated region fallthrough
CT: control target
= control target key end

     0   :  { %v887_v1 = vmov 2   ;;  %v888_v2 = vmov 1   ;;  %v889_v5 = vmov 0   ;;  %s1098_s0 = inlined_call_operand.vmem [shape: f32[3,8], index: 0, kind: input, shape index: {}]   ;;  %s1099_s1 = inlined_call_operand.vmem [shape: f32[32,3], index: 1, kind: input, shape index: {}]   ;;  %s1100_s2 = inlined_call_operand.vmem [shape: f32[32,1], index: 2, kind: input, shape index: {}]   ;;  %s1101_s3 = inlined_call_operand.vmem [shape: bf16[64,32], index: 3, kind: input, shape index: {}]   ;;  %s1102_s4 = inlined_call_operand.vmem [shape: f32[64,1], index: 4, kind: input, shape index: {}]   ;;  %s1103_s5 = inlined_call_operand.vmem [shape: bf16[4,64], index: 5, kind: input, shape index: {}]   ;;  %s1104_s6 = inlined_call_operand.vmem [shape: f32[4,1], index: 6, kind: input, shape index: {}]   ;;  %s1105_s7 = inlined_call_operand.hbm [shape: f32[4,8], index: 7, kind: output, shape index: {}]  }
   0x1   :  { %v30_v0 = vld [vmem:[%s1099_s1] sm:$0xff]  ;;  %836 = vset.pattern.permute.xlu0 %v887_v1  ;;  %835 = vset.pattern.permute.xlu1 %v888_v2  ;;  %v32_v3 = vld [vmem:[%s1099_s1 + $0x10] sm:$0xff]  ;;  %v31_v4 = vld [vmem:[%s1099_s1 + $0x8] sm:$0xff] }
   0x2   :  { %193 = vperm.xlu0 %836, %v30_v0   ;;  %109 = vperm.xlu1 %835, %v30_v0  }
   0x3   :  { %461 = vmatprep.mubr.bf16.mxu0 %v889_v5  ;;  %534 = vmatprep.mubr.bf16.mxu1 %v889_v5 }
   0x6   :  { %201 = vperm.xlu0 %836, %v32_v3   ;;  %113 = vperm.xlu1 %835, %v31_v4  }
   0x7   :  { %12 = vsyncpa [#allocation3], 0  ;;  %v33_v6 = vld [vmem:[%s1099_s1 + $0x18] sm:$0xff]  ;;  %v277_v7 = vld [vmem:[%s1100_s2 + $0x8] sm:$0xff]  ;;  %v56_v20 = vlaneseq  ;;  %vm416_vm0 = vcmask 261120   ;;  %vm630_vm1 = vcmask 523264  }
   0x8   :  { %v348_v8 = vld [vmem:[%s1102_s4] sm:$0xff]  ;;  %v350_v9 = vld [vmem:[%s1102_s4 + $0x10] sm:$0xff]  ;;  %v279_v15 = vld [vmem:[%s1100_s2 + $0x18] sm:$0xff]  ;;  %vm716_vm2 = vcmask 1043456  }
   0x9   :  { %v352_v10 = vld [vmem:[%s1102_s4 + $0x20] sm:$0xff]  ;;  %v354_v12 = vld [vmem:[%s1102_s4 + $0x30] sm:$0xff]  ;;  %v349_v16 = vld [vmem:[%s1102_s4 + $0x8] sm:$0xff]  ;;  %v57_v21 = vshrl.u32 %v56_v20, 7 }
   0xa   :  { %840 = vset.pattern.permute.xlu0 %v889_v5  ;;  %837 = vset.pattern.permute.xlu1 %v887_v1  ;;  %v276_v11 = vld [vmem:[%s1100_s2] sm:$0xff]  ;;  %v278_v13 = vld [vmem:[%s1100_s2 + $0x10] sm:$0xff]  ;;  %v351_v17 = vld [vmem:[%s1102_s4 + $0x18] sm:$0xff] }
   0xb   :  { %36 = vperm.xlu0 %840, %v30_v0   ;;  %197 = vperm.xlu1 %837, %v31_v4   ;;  %v624_v14 = vld [vmem:[%s1104_s6] sm:$0xf]  ;;  %v353_v18 = vld [vmem:[%s1102_s4 + $0x28] sm:$0xff]  ;;  %v355_v19 = vld [vmem:[%s1102_s4 + $0x38] sm:$0xff]  ;;  %v126_v24 = vsub.s32 1, %v57_v21  ;;  %v130_v25 = vsub.s32 5, %v57_v21 }
   0xc   :  { %v28_v26 = vld [vmem:[%s1098_s0] sm:$0x77]  ;;  %v29_v27 = vld [vmem:[%s1098_s0 + $0x8] sm:$0x77]  ;;  %v210_v30 = vsub.s32 2, %v57_v21  ;;  %v214_v31 = vsub.s32 6, %v57_v21 }
   0xd   :  { %v58_v32 = vsub.s32 0, %v57_v21  ;;  %v62_v33 = vsub.s32 4, %v57_v21  ;;  %v127_v34 = vrot.slane %v28_v26, %v126_v24  ;;  %v131_v35 = vrot.slane %v28_v26, %v130_v25 }
   0xe   :  { %v135_v36 = vrot.slane %v29_v27, %v126_v24  ;;  %v139_v37 = vrot.slane %v29_v27, %v130_v25  ;;  %v211_v38 = vrot.slane %v28_v26, %v210_v30  ;;  %v215_v39 = vrot.slane %v28_v26, %v214_v31 }
   0xf   :  { %41 = vperm.xlu0 %840, %v31_v4   ;;  %838 = vset.pattern.permute.xlu1 %v889_v5  ;;  %v219_v40 = vrot.slane %v29_v27, %v210_v30  ;;  %v223_v41 = vrot.slane %v29_v27, %v214_v31  ;;  %v59_v44 = vrot.slane %v28_v26, %v58_v32 }
  0x10   :  { %46 = vperm.xlu1 %838, %v32_v3   ;;  %v63_v45 = vrot.slane %v28_v26, %v62_v33  ;;  %v67_v46 = vrot.slane %v29_v27, %v58_v32  ;;  %v71_v47 = vrot.slane %v29_v27, %v62_v33  ;;  %v993_v48 = vrot.slane %v127_v34, %v126_v24 }
  0x11   :  { %v995_v49 = vrot.slane %v131_v35, %v126_v24  ;;  %v997_v50 = vrot.slane %v135_v36, %v126_v24  ;;  %v999_v51 = vrot.slane %v139_v37, %v126_v24  ;;  %v1001_v52 = vrot.slane %v211_v38, %v210_v30 }
  0x12   :  { %v1003_v53 = vrot.slane %v215_v39, %v210_v30  ;;  %v1005_v54 = vrot.slane %v219_v40, %v210_v30  ;;  %v1007_v55 = vrot.slane %v223_v41, %v210_v30  ;;  %v79_v56 = vrot.slane %v59_v44, %v58_v32 }
  0x13   :  { %51 = vperm.xlu0 %840, %v33_v6   ;;  %v83_v57 = vrot.slane %v63_v45, %v58_v32  ;;  %v87_v58 = vrot.slane %v67_v46, %v58_v32  ;;  %v91_v59 = vrot.slane %v71_v47, %v58_v32 }
  0x14   :  { %839 = vset.pattern.permute.xlu1 %v888_v2 }
  0x15   :  { %117 = vperm.xlu1 %839, %v32_v3  }
  0x17   :  { %287 = vperm.xlu0 %840, %v277_v7  }
  0x19   :  { %121 = vperm.xlu1 %839, %v33_v6  }
  0x1b   :  { %358 = vperm.xlu0 %840, %v348_v8  }
  0x1d   :  { %841 = vset.pattern.permute.xlu1 %v887_v1 }
  0x1e   :  { %205 = vperm.xlu1 %841, %v33_v6  }
  0x1f   :  { %368 = vperm.xlu0 %840, %v350_v9  }
  0x22   :  { %842 = vset.pattern.permute.xlu1 %v889_v5 }
  0x23   :  { %378 = vperm.xlu0 %840, %v352_v10   ;;  %282 = vperm.xlu1 %842, %v276_v11  }
  0x27   :  { %388 = vperm.xlu0 %840, %v354_v12   ;;  %292 = vperm.xlu1 %842, %v278_v13  }
  0x2b   :  { %627 = vperm.xlu0 %840, %v624_v14   ;;  %297 = vperm.xlu1 %842, %v279_v15  }
  0x2f   :  { %363 = vperm.xlu1 %842, %v349_v16  }
  0x33   :  { %373 = vperm.xlu1 %842, %v351_v17  }
  0x37   :  { %383 = vperm.xlu1 %842, %v353_v18  }
  0x3b   :  { %393 = vperm.xlu1 %842, %v355_v19  }
  0x81   :  { %v110_v22 = vpop.permute.xlu1 %109  ;;  %v194_v23 = vpop.permute.xlu0 %193 }
  0x82   :  { %v160_v61 = vmul.f32 %v993_v48, %v110_v22  ;;  %v161_v62 = vmul.f32 %v995_v49, %v110_v22  ;;  %v162_v63 = vmul.f32 %v997_v50, %v110_v22  ;;  %v163_v0 = vmul.f32 %v999_v51, %v110_v22 }
  0x83   :  { %v1014_v1 = vmul.f32 %v1001_v52, %v194_v23  ;;  %v245_v2 = vmul.f32 %v1003_v53, %v194_v23  ;;  %v1018_v3 = vmul.f32 %v1005_v54, %v194_v23  ;;  %v247_v4 = vmul.f32 %v1007_v55, %v194_v23 }
  0x85   :  { %v114_v28 = vpop.permute.xlu1 %113  ;;  %v202_v29 = vpop.permute.xlu0 %201 }
  0x86   :  { %v164_v7 = vmul.f32 %v993_v48, %v114_v28  ;;  %v165_v8 = vmul.f32 %v995_v49, %v114_v28  ;;  %v166_v9 = vmul.f32 %v997_v50, %v114_v28  ;;  %v167_v10 = vmul.f32 %v999_v51, %v114_v28 }
  0x87   :  { %v252_v20 = vmul.f32 %v1001_v52, %v202_v29  ;;  %v253_v21 = vmul.f32 %v1003_v53, %v202_v29  ;;  %v254_v22 = vmul.f32 %v1005_v54, %v202_v29  ;;  %v255_v23 = vmul.f32 %v1007_v55, %v202_v29 }
  0x8a   :  { %v198_v42 = vpop.permute.xlu1 %197  ;;  %v37_v43 = vpop.permute.xlu0 %36 }
  0x8b   :  { %v92_v11 = vmul.f32 %v79_v56, %v37_v43  ;;  %v93_v12 = vmul.f32 %v83_v57, %v37_v43  ;;  %v94_v13 = vmul.f32 %v87_v58, %v37_v43  ;;  %v95_v14 = vmul.f32 %v91_v59, %v37_v43 }
  0x8c   :  { %v248_v24 = vmul.f32 %v1001_v52, %v198_v42  ;;  %v249_v25 = vmul.f32 %v1003_v53, %v198_v42  ;;  %v250_v26 = vmul.f32 %v1005_v54, %v198_v42  ;;  %v251_v27 = vmul.f32 %v1007_v55, %v198_v42 }
  0x8d   :  { %v176_v28 = vadd.f32 %v160_v61, %v92_v11  ;;  %v178_v30 = vadd.f32 %v162_v63, %v94_v13  ;;  %v177_v32 = vadd.f32 %v161_v62, %v93_v12  ;;  %v179_v33 = vadd.f32 %v163_v0, %v95_v14 }
  0x8e   :  { %v42_v6 = vpop.permute.xlu0 %41 }
  0x8f   :  { %v47_v60 = vpop.permute.xlu1 %46  ;;  %v96_v15 = vmul.f32 %v79_v56, %v42_v6  ;;  %v97_v16 = vmul.f32 %v83_v57, %v42_v6  ;;  %v98_v17 = vmul.f32 %v87_v58, %v42_v6  ;;  %v99_v18 = vmul.f32 %v91_v59, %v42_v6 }
  0x90   :  { %v100_v43 = vmul.f32 %v79_v56, %v47_v60  ;;  %v101_v42 = vmul.f32 %v83_v57, %v47_v60  ;;  %v102_v44 = vmul.f32 %v87_v58, %v47_v60  ;;  %v103_v45 = vmul.f32 %v91_v59, %v47_v60 }
  0x91   :  { %v180_v34 = vadd.f32 %v164_v7, %v96_v15  ;;  %v182_v35 = vadd.f32 %v166_v9, %v98_v17  ;;  %v181_v37 = vadd.f32 %v165_v8, %v97_v16  ;;  %v183_v38 = vadd.f32 %v167_v10, %v99_v18 }
  0x92   :  { %v52_v31 = vpop.permute.xlu0 %51  ;;  %v262_v16 = vadd.f32 %v1018_v3, %v178_v30 }
  0x93   :  { %v104_v46 = vmul.f32 %v79_v56, %v52_v31  ;;  %v105_v47 = vmul.f32 %v83_v57, %v52_v31  ;;  %v106_v61 = vmul.f32 %v87_v58, %v52_v31  ;;  %v107_v62 = vmul.f32 %v91_v59, %v52_v31 }
  0x94   :  { %v118_v19 = vpop.permute.xlu1 %117  ;;  %v265_v63 = vadd.f32 %v249_v25, %v181_v37  ;;  %v267_v0 = vadd.f32 %v251_v27, %v183_v38  ;;  %v264_v6 = vadd.f32 %v248_v24, %v180_v34  ;;  %v266_v7 = vadd.f32 %v250_v26, %v182_v35 }
  0x95   :  { %v168_v29 = vmul.f32 %v993_v48, %v118_v19  ;;  %v169_v39 = vmul.f32 %v995_v49, %v118_v19  ;;  %v170_v40 = vmul.f32 %v997_v50, %v118_v19  ;;  %v171_v41 = vmul.f32 %v999_v51, %v118_v19 }
  0x96   :  { %v288_v12 = vpop.permute.xlu0 %287  ;;  %v261_v57 = vadd.f32 %v245_v2, %v177_v32  ;;  %v263_v58 = vadd.f32 %v247_v4, %v179_v33  ;;  %v260_v59 = vadd.f32 %v1014_v1, %v176_v28 }
  0x97   :  { %v184_v8 = vadd.f32 %v168_v29, %v100_v43  ;;  %v185_v9 = vadd.f32 %v169_v39, %v101_v42  ;;  %v186_v10 = vadd.f32 %v170_v40, %v102_v44  ;;  %v187_v11 = vadd.f32 %v171_v41, %v103_v45 }
  0x98   :  { %v122_v36 = vpop.permute.xlu1 %121  ;;  %v305_v17 = vadd.f32 %v288_v12, %v265_v63  ;;  %v307_v18 = vadd.f32 %v288_v12, %v267_v0  ;;  %v304_v19 = vadd.f32 %v288_v12, %v264_v6  ;;  %v306_v24 = vadd.f32 %v288_v12, %v266_v7 }
  0x99   :  { %v172_v14 = vmul.f32 %v993_v48, %v122_v36  ;;  %v173_v15 = vmul.f32 %v995_v49, %v122_v36  ;;  %v174_v60 = vmul.f32 %v997_v50, %v122_v36  ;;  %v175_v56 = vmul.f32 %v999_v51, %v122_v36 }
  0x9a   :  { %v268_v25 = vadd.f32 %v252_v20, %v184_v8  ;;  %v269_v26 = vadd.f32 %v253_v21, %v185_v9  ;;  %v270_v27 = vadd.f32 %v254_v22, %v186_v10  ;;  %v271_v48 = vadd.f32 %v255_v23, %v187_v11 }
  0x9b   :  { %v188_v31 = vadd.f32 %v172_v14, %v104_v46  ;;  %v189_v49 = vadd.f32 %v173_v15, %v105_v47  ;;  %v190_v34 = vadd.f32 %v174_v60, %v106_v61  ;;  %v191_v50 = vadd.f32 %v175_v56, %v107_v62 }
  0x9c   :  { %v321_v36 = vmax.f32 %v305_v17, 0.0  ;;  %v323_v37 = vmax.f32 %v307_v18, 0.0  ;;  %v320_v38 = vmax.f32 %v304_v19, 0.0  ;;  %v322_v29 = vmax.f32 %v306_v24, 0.0  ;;  %v359_v17 = vpop.permute.xlu0 %358 }
  0x9d   :  { %v206_v13 = vpop.permute.xlu1 %205 }
  0x9e   :  { %v256_v1 = vmul.f32 %v1001_v52, %v206_v13  ;;  %v257_v3 = vmul.f32 %v1003_v53, %v206_v13  ;;  %v258_v28 = vmul.f32 %v1005_v54, %v206_v13  ;;  %v259_v20 = vmul.f32 %v1007_v55, %v206_v13 }
  0xa0   :  { %v272_v54 = vadd.f32 %v256_v1, %v188_v31  ;;  %v273_v45 = vadd.f32 %v257_v3, %v189_v49  ;;  %v274_v55 = vadd.f32 %v258_v28, %v190_v34  ;;  %v275_v46 = vadd.f32 %v259_v20, %v191_v50 }
  0xa2   :  { %v283_v35 = vpop.permute.xlu1 %282 }
  0xa3   :  { %v301_v51 = vadd.f32 %v283_v35, %v261_v57  ;;  %v303_v2 = vadd.f32 %v283_v35, %v263_v58  ;;  %v300_v4 = vadd.f32 %v283_v35, %v260_v59  ;;  %v302_v32 = vadd.f32 %v283_v35, %v262_v16  ;;  %v843_v57 = vld [vmem:[%s1101_s3] sm:$0xff]   ;;  %v844_v58 = vld [vmem:[%s1101_s3 + $0x8] sm:$0xff]   ;;  %v845_v59 = vld [vmem:[%s1101_s3 + $0x10] sm:$0xff]  }
  0xa4   :  { %v846_v16 = vld [vmem:[%s1101_s3 + $0x18] sm:$0xff]  }
  0xa5   :  { %v317_v21 = vmax.f32 %v301_v51, 0.0  ;;  %v319_v22 = vmax.f32 %v303_v2, 0.0  ;;  %v316_v23 = vmax.f32 %v300_v4, 0.0  ;;  %v318_v30 = vmax.f32 %v302_v32, 0.0 }
  0xa6   :  { %v293_v33 = vpop.permute.xlu1 %292 }
  0xa7   :  { %v308_v39 = vadd.f32 %v293_v33, %v268_v25  ;;  %v309_v40 = vadd.f32 %v293_v33, %v269_v26  ;;  %v310_v41 = vadd.f32 %v293_v33, %v270_v27  ;;  %v311_v43 = vadd.f32 %v293_v33, %v271_v48  ;;  %v369_v33 = vpop.permute.xlu0 %368 }
  0xa8   :  { %v341_v52 = vpack.c.bf16 %v321_v36, %v317_v21  ;;  %v343_v42 = vpack.c.bf16 %v323_v37, %v319_v22  ;;  %v340_v53 = vpack.c.bf16 %v320_v38, %v316_v23  ;;  %v342_v44 = vpack.c.bf16 %v322_v29, %v318_v30 }
  0xa9   :  { %v325_v6 = vmax.f32 %v309_v40, 0.0  ;;  %v327_v7 = vmax.f32 %v311_v43, 0.0  ;;  %v324_v8 = vmax.f32 %v308_v39, 0.0  ;;  %v326_v9 = vmax.f32 %v310_v41, 0.0 }
  0xaa   :  { %429 = vmatprep.subr.bf16.mxu0 %v341_v52  ;;  %502 = vmatprep.subr.bf16.mxu1 %v343_v42  ;;  %v298_v47 = vpop.permute.xlu1 %297 }
  0xab   :  { %v312_v61 = vadd.f32 %v298_v47, %v272_v54  ;;  %v313_v62 = vadd.f32 %v298_v47, %v273_v45  ;;  %v314_v63 = vadd.f32 %v298_v47, %v274_v55  ;;  %v315_v0 = vadd.f32 %v298_v47, %v275_v46  ;;  %430 = vmatpush1.bf16.msra.mxu0 %v340_v53 }
  0xac   :  { %503 = vmatpush1.bf16.msra.mxu1 %v342_v44 }
  0xad   :  { %v329_v10 = vmax.f32 %v313_v62, 0.0  ;;  %v331_v11 = vmax.f32 %v315_v0, 0.0  ;;  %v328_v12 = vmax.f32 %v312_v61, 0.0  ;;  %v330_v13 = vmax.f32 %v314_v63, 0.0 }
  0xae   :  { %v364_v18 = vpop.permute.xlu1 %363 }
  0xaf   :  { %v345_v14 = vpack.c.bf16 %v329_v10, %v325_v6  ;;  %v347_v15 = vpack.c.bf16 %v331_v11, %v327_v7  ;;  %v344_v60 = vpack.c.bf16 %v328_v12, %v324_v8  ;;  %v346_v56 = vpack.c.bf16 %v330_v13, %v326_v9 }
  0xb1   :  { %431 = vmatprep.subr.bf16.mxu0 %v345_v14  ;;  %504 = vmatprep.subr.bf16.mxu1 %v347_v15  ;;  %v379_v14 = vpop.permute.xlu0 %378 }
  0xb2   :  { %432 = vmatpush1.bf16.msra.mxu0 %v344_v60  ;;  %505 = vmatpush1.bf16.msra.mxu1 %v346_v56  ;;  %v374_v36 = vpop.permute.xlu1 %373 }
  0xb5   :  { %821 = vmatmul.mubr.msk.bf16.vlgmr.msra.gmra.mrb[0].mxu0 %vm416_vm0, %v843_v57  ;;  %825 = vmatmul.mubr.msk.bf16.vlgmr.msra.gmra.mrb[0].mxu1 %vm416_vm0, %v843_v57 }
  0xb6   :  { %471 = vmatprep.mubr.bf16.mxu0 %v889_v5  ;;  %544 = vmatprep.mubr.bf16.mxu1 %v889_v5  ;;  %v384_v15 = vpop.permute.xlu1 %383 }
  0xbd   :  { %822 = vmatmul.mubr.msk.bf16.gmra.mrb[4].mxu0 %vm416_vm0, %v844_v58  ;;  %826 = vmatmul.mubr.msk.bf16.gmra.mrb[4].mxu1 %vm416_vm0, %v844_v58 }
  0xbe   :  { %481 = vmatprep.mubr.bf16.mxu0 %v889_v5  ;;  %554 = vmatprep.mubr.bf16.mxu1 %v889_v5 }
  0xc5   :  { %823 = vmatmul.mubr.msk.bf16.gmra.mrb[8].mxu0 %vm416_vm0, %v845_v59  ;;  %827 = vmatmul.mubr.msk.bf16.gmra.mrb[8].mxu1 %vm416_vm0, %v845_v59 }
  0xc6   :  { %491 = vmatprep.mubr.bf16.mxu0 %v889_v5  ;;  %564 = vmatprep.mubr.bf16.mxu1 %v889_v5 }
  0xcd   :  { %824 = vmatmul.mubr.msk.bf16.gmra.mrb[12].mxu0 %vm416_vm0, %v846_v16  ;;  %828 = vmatmul.mubr.msk.bf16.gmra.mrb[12].mxu1 %vm416_vm0, %v846_v16 }
  0xce   :  { %666 = vmatprep.mubr.bf16.mxu0 %v889_v5  ;;  %707 = vmatprep.mubr.bf16.mxu1 %v889_v5 }
 0x188   :  { %v463_v19 = vpop.f32.mrb[0].mxu0  ;;  %v536_v24 = vpop.f32.mrb[0].mxu1 }
 0x189   :  { %v464_v25 = vadd.f32 %v463_v19, %v359_v17  ;;  %v537_v26 = vadd.f32 %v536_v24, %v359_v17  ;;  %v465_v27 = vpop.f32.mrb[1].mxu0  ;;  %v538_v48 = vpop.f32.mrb[1].mxu1 }
 0x18a   :  { %v466_v31 = vadd.f32 %v465_v27, %v359_v17  ;;  %v539_v49 = vadd.f32 %v538_v48, %v359_v17  ;;  %v467_v34 = vpop.f32.mrb[2].mxu0  ;;  %v540_v50 = vpop.f32.mrb[2].mxu1 }
 0x18b   :  { %v468_v35 = vadd.f32 %v467_v34, %v364_v18  ;;  %v541_v51 = vadd.f32 %v540_v50, %v364_v18  ;;  %v469_v2 = vpop.f32.mrb[3].mxu0  ;;  %v542_v4 = vpop.f32.mrb[3].mxu1  ;;  %v575_v3 = vmax.f32 %v464_v25, 0.0  ;;  %v577_v5 = vmax.f32 %v537_v26, 0.0 }
 0x18c   :  { %v470_v32 = vadd.f32 %v469_v2, %v364_v18  ;;  %v543_v1 = vadd.f32 %v542_v4, %v364_v18  ;;  %v576_v21 = vmax.f32 %v466_v31, 0.0  ;;  %v578_v22 = vmax.f32 %v539_v49, 0.0 }
 0x18d   :  { %v579_v28 = vmax.f32 %v468_v35, 0.0  ;;  %v581_v20 = vmax.f32 %v541_v51, 0.0 }
 0x18e   :  { %v580_v23 = vmax.f32 %v470_v32, 0.0  ;;  %v582_v30 = vmax.f32 %v543_v1, 0.0 }
 0x18f   :  { %v608_v37 = vpack.c.bf16 %v579_v28, %v575_v3  ;;  %v610_v38 = vpack.c.bf16 %v581_v20, %v577_v5 }
 0x190   :  { %v609_v29 = vpack.c.bf16 %v580_v23, %v576_v21  ;;  %v611_v39 = vpack.c.bf16 %v582_v30, %v578_v22  ;;  %v473_v40 = vpop.f32.mrb[4].mxu0  ;;  %v546_v41 = vpop.f32.mrb[4].mxu1 }
 0x191   :  { %v474_v43 = vadd.f32 %v473_v40, %v369_v33  ;;  %v547_v52 = vadd.f32 %v546_v41, %v369_v33  ;;  %v475_v42 = vpop.f32.mrb[5].mxu0  ;;  %v548_v53 = vpop.f32.mrb[5].mxu1 }
 0x192   :  { %v476_v44 = vadd.f32 %v475_v42, %v369_v33  ;;  %v549_v54 = vadd.f32 %v548_v53, %v369_v33  ;;  %v477_v45 = vpop.f32.mrb[6].mxu0  ;;  %v550_v55 = vpop.f32.mrb[6].mxu1  ;;  %634 = vmatprep.subr.bf16.mxu0 %v609_v29  ;;  %675 = vmatprep.subr.bf16.mxu1 %v611_v39 }
 0x193   :  { %v478_v46 = vadd.f32 %v477_v45, %v374_v36  ;;  %v551_v47 = vadd.f32 %v550_v55, %v374_v36  ;;  %v479_v61 = vpop.f32.mrb[7].mxu0  ;;  %v552_v62 = vpop.f32.mrb[7].mxu1  ;;  %635 = vmatpush1.bf16.msra.mxu0 %v608_v37  ;;  %676 = vmatpush1.bf16.msra.mxu1 %v610_v38  ;;  %v583_v6 = vmax.f32 %v474_v43, 0.0  ;;  %v585_v7 = vmax.f32 %v547_v52, 0.0 }
 0x194   :  { %v480_v63 = vadd.f32 %v479_v61, %v374_v36  ;;  %v553_v0 = vadd.f32 %v552_v62, %v374_v36  ;;  %v584_v10 = vmax.f32 %v476_v44, 0.0  ;;  %v586_v11 = vmax.f32 %v549_v54, 0.0  ;;  %v389_v21 = vpop.permute.xlu0 %388  ;;  %v394_v22 = vpop.permute.xlu1 %393 }
 0x195   :  { %v587_v8 = vmax.f32 %v478_v46, 0.0  ;;  %v589_v9 = vmax.f32 %v551_v47, 0.0 }
 0x196   :  { %v588_v12 = vmax.f32 %v480_v63, 0.0  ;;  %v590_v13 = vmax.f32 %v553_v0, 0.0 }
 0x197   :  { %v612_v60 = vpack.c.bf16 %v587_v8, %v583_v6  ;;  %v614_v56 = vpack.c.bf16 %v589_v9, %v585_v7 }
 0x198   :  { %v613_v57 = vpack.c.bf16 %v588_v12, %v584_v10  ;;  %v615_v58 = vpack.c.bf16 %v590_v13, %v586_v11  ;;  %v483_v59 = vpop.f32.mrb[8].mxu0  ;;  %v556_v16 = vpop.f32.mrb[8].mxu1 }
 0x199   :  { %v484_v17 = vadd.f32 %v483_v59, %v379_v14  ;;  %v557_v18 = vadd.f32 %v556_v16, %v379_v14  ;;  %v485_v19 = vpop.f32.mrb[9].mxu0  ;;  %v558_v24 = vpop.f32.mrb[9].mxu1 }
 0x19a   :  { %v486_v25 = vadd.f32 %v485_v19, %v379_v14  ;;  %v559_v26 = vadd.f32 %v558_v24, %v379_v14  ;;  %v487_v27 = vpop.f32.mrb[10].mxu0  ;;  %v560_v48 = vpop.f32.mrb[10].mxu1  ;;  %636 = vmatprep.subr.bf16.mxu0 %v613_v57  ;;  %677 = vmatprep.subr.bf16.mxu1 %v615_v58  ;;  %v607_v14 = vld [vmem:[%s1103_s5] sm:$0x3] }
 0x19b   :  { %v488_v31 = vadd.f32 %v487_v27, %v384_v15  ;;  %v561_v49 = vadd.f32 %v560_v48, %v384_v15  ;;  %v489_v34 = vpop.f32.mrb[11].mxu0  ;;  %v562_v50 = vpop.f32.mrb[11].mxu1  ;;  %637 = vmatpush1.bf16.msra.mxu0 %v612_v60  ;;  %678 = vmatpush1.bf16.msra.mxu1 %v614_v56  ;;  %v591_v2 = vmax.f32 %v484_v17, 0.0  ;;  %v593_v4 = vmax.f32 %v557_v18, 0.0 }
 0x19c   :  { %v490_v35 = vadd.f32 %v489_v34, %v384_v15  ;;  %v563_v51 = vadd.f32 %v562_v50, %v384_v15  ;;  %v592_v3 = vmax.f32 %v486_v25, 0.0  ;;  %v594_v5 = vmax.f32 %v559_v26, 0.0  ;;  %v628_v15 = vpop.permute.xlu0 %627 }
 0x19d   :  { %v595_v32 = vmax.f32 %v488_v31, 0.0  ;;  %v597_v1 = vmax.f32 %v561_v49, 0.0 }
 0x19e   :  { %v596_v28 = vmax.f32 %v490_v35, 0.0  ;;  %v598_v20 = vmax.f32 %v563_v51, 0.0 }
 0x19f   :  { %v616_v23 = vpack.c.bf16 %v595_v32, %v591_v2  ;;  %v618_v30 = vpack.c.bf16 %v597_v1, %v593_v4 }
 0x1a0   :  { %v617_v33 = vpack.c.bf16 %v596_v28, %v592_v3  ;;  %v619_v36 = vpack.c.bf16 %v598_v20, %v594_v5  ;;  %v493_v37 = vpop.f32.mrb[12].mxu0  ;;  %v566_v38 = vpop.f32.mrb[12].mxu1 }
 0x1a1   :  { %v494_v29 = vadd.f32 %v493_v37, %v389_v21  ;;  %v567_v39 = vadd.f32 %v566_v38, %v389_v21  ;;  %v495_v40 = vpop.f32.mrb[13].mxu0  ;;  %v568_v41 = vpop.f32.mrb[13].mxu1 }
 0x1a2   :  { %v496_v43 = vadd.f32 %v495_v40, %v389_v21  ;;  %v569_v52 = vadd.f32 %v568_v41, %v389_v21  ;;  %v497_v42 = vpop.f32.mrb[14].mxu0  ;;  %v570_v53 = vpop.f32.mrb[14].mxu1  ;;  %638 = vmatprep.subr.bf16.mxu0 %v617_v33  ;;  %679 = vmatprep.subr.bf16.mxu1 %v619_v36 }
 0x1a3   :  { %v498_v44 = vadd.f32 %v497_v42, %v394_v22  ;;  %v571_v54 = vadd.f32 %v570_v53, %v394_v22  ;;  %v499_v45 = vpop.f32.mrb[15].mxu0  ;;  %v572_v55 = vpop.f32.mrb[15].mxu1  ;;  %639 = vmatpush1.bf16.msra.mxu0 %v616_v23  ;;  %680 = vmatpush1.bf16.msra.mxu1 %v618_v30  ;;  %v599_v61 = vmax.f32 %v494_v29, 0.0  ;;  %v601_v62 = vmax.f32 %v567_v39, 0.0 }
 0x1a4   :  { %v500_v46 = vadd.f32 %v499_v45, %v394_v22  ;;  %v573_v47 = vadd.f32 %v572_v55, %v394_v22  ;;  %v600_v6 = vmax.f32 %v496_v43, 0.0  ;;  %v602_v7 = vmax.f32 %v569_v52, 0.0 }
 0x1a5   :  { %v603_v63 = vmax.f32 %v498_v44, 0.0  ;;  %v605_v0 = vmax.f32 %v571_v54, 0.0 }
 0x1a6   :  { %v604_v8 = vmax.f32 %v500_v46, 0.0  ;;  %v606_v9 = vmax.f32 %v573_v47, 0.0 }
 0x1a7   :  { %v620_v10 = vpack.c.bf16 %v603_v63, %v599_v61  ;;  %v622_v11 = vpack.c.bf16 %v605_v0, %v601_v62 }
 0x1a8   :  { %v621_v12 = vpack.c.bf16 %v604_v8, %v600_v6  ;;  %v623_v13 = vpack.c.bf16 %v606_v9, %v602_v7 }
 0x1aa   :  { %640 = vmatprep.subr.bf16.mxu0 %v621_v12  ;;  %681 = vmatprep.subr.bf16.mxu1 %v623_v13 }
 0x1ab   :  { %641 = vmatpush1.bf16.msra.mxu0 %v620_v10  ;;  %682 = vmatpush1.bf16.msra.mxu1 %v622_v11 }
 0x1ae   :  { %829 = vmatmul.mubr.msk.bf16.vlgmr.msra.gmra.mrb[16].mxu0 %vm630_vm1, %v607_v14  ;;  %830 = vmatmul.mubr.msk.bf16.vlgmr.msra.gmra.mrb[16].mxu1 %vm630_vm1, %v607_v14 }
 0x281   :  { %v668_v60 = vpop.f32.mrb[16].mxu0  ;;  %v709_v56 = vpop.f32.mrb[16].mxu1 }
 0x282   :  { %v669_v57 = vadd.f32 %v668_v60, %v628_v15  ;;  %v710_v58 = vadd.f32 %v709_v56, %v628_v15  ;;  %v670_v59 = vpop.f32.mrb[17].mxu0  ;;  %v711_v16 = vpop.f32.mrb[17].mxu1 }
 0x283   :  { %v671_v17 = vadd.f32 %v670_v59, %v628_v15  ;;  %v712_v18 = vadd.f32 %v711_v16, %v628_v15  ;;  %v672_v19 = vpop.f32.mrb[18].mxu0  ;;  %v713_v24 = vpop.f32.mrb[18].mxu1 }
 0x284   :  { %v717_v25 = vsel %vm716_vm2, %v669_v57, -inf  ;;  %v731_v26 = vsel %vm716_vm2, %v710_v58, -inf  ;;  %v673_v27 = vpop.f32.mrb[19].mxu0  ;;  %v714_v48 = vpop.f32.mrb[19].mxu1 }
 0x285   :  { %v718_v31 = vrot.slane %v717_v25, 4  ;;  %v732_v49 = vrot.slane %v731_v26, 4  ;;  %v724_v34 = vsel %vm716_vm2, %v671_v17, -inf  ;;  %v738_v50 = vsel %vm716_vm2, %v712_v18, -inf }
 0x286   :  { %v725_v35 = vrot.slane %v724_v34, 4  ;;  %v739_v51 = vrot.slane %v738_v50, 4 }
 0x287   :  { %v719_v2 = vmax.f32 %v717_v25, %v718_v31  ;;  %v733_v4 = vmax.f32 %v731_v26, %v732_v49 }
 0x288   :  { %v726_v32 = vmax.f32 %v724_v34, %v725_v35  ;;  %v740_v1 = vmax.f32 %v738_v50, %v739_v51 }
 0x289   :  { %v720_v3 = vrot.slane %v719_v2, 2  ;;  %v734_v5 = vrot.slane %v733_v4, 2 }
 0x28a   :  { %v727_v28 = vrot.slane %v726_v32, 2  ;;  %v741_v20 = vrot.slane %v740_v1, 2 }
 0x28b   :  { %v721_v21 = vmax.f32 %v719_v2, %v720_v3  ;;  %v735_v22 = vmax.f32 %v733_v4, %v734_v5 }
 0x28c   :  { %v728_v23 = vmax.f32 %v726_v32, %v727_v28  ;;  %v742_v30 = vmax.f32 %v740_v1, %v741_v20 }
 0x28d   :  { %v722_v33 = vrot.slane %v721_v21, 1  ;;  %v736_v36 = vrot.slane %v735_v22, 1 }
 0x28e   :  { %v729_v37 = vrot.slane %v728_v23, 1  ;;  %v743_v38 = vrot.slane %v742_v30, 1 }
 0x28f   :  { %v723_v29 = vmax.f32 %v721_v21, %v722_v33  ;;  %v737_v39 = vmax.f32 %v735_v22, %v736_v36 }
 0x290   :  { %v730_v40 = vmax.f32 %v728_v23, %v729_v37  ;;  %v744_v41 = vmax.f32 %v742_v30, %v743_v38 }
 0x291   :  { %v745_v43 = vsub.f32 %v669_v57, %v723_v29  ;;  %v747_v52 = vsub.f32 %v710_v58, %v737_v39 }
 0x292   :  { %v746_v42 = vsub.f32 %v671_v17, %v730_v40  ;;  %v748_v53 = vsub.f32 %v712_v18, %v744_v41 }
 0x293   :  { %v749_v44 = vmul.f32 1.442695, %v745_v43  ;;  %v753_v54 = vmul.f32 1.442695, %v747_v52 }
 0x294   :  { %v751_v45 = vmul.f32 1.442695, %v746_v42  ;;  %v755_v55 = vmul.f32 1.442695, %v748_v53 }
 0x295   :  { %847 = vpow2.f32 %v749_v44 }
 0x296   :  { %849 = vpow2.f32 %v753_v54 }
 0x297   :  { %851 = vpow2.f32 %v751_v45 }
 0x298   :  { %853 = vpow2.f32 %v755_v55 }
 0x29f   :  { %v848_v46 = vpop.eup %847 }
 0x2a0   :  { %v850_v47 = vpop.eup %849  ;;  %v757_v61 = vsel %vm716_vm2, %v848_v46, 0.0 }
 0x2a1   :  { %v852_v62 = vpop.eup %851  ;;  %v758_v63 = vrot.slane %v757_v61, 4  ;;  %v771_v0 = vsel %vm716_vm2, %v850_v47, 0.0 }
 0x2a2   :  { %v854_v6 = vpop.eup %853  ;;  %v772_v7 = vrot.slane %v771_v0, 4  ;;  %v764_v8 = vsel %vm716_vm2, %v852_v62, 0.0 }
 0x2a3   :  { %v759_v9 = vadd.f32 %v758_v63, %v757_v61  ;;  %v765_v10 = vrot.slane %v764_v8, 4  ;;  %v778_v11 = vsel %vm716_vm2, %v854_v6, 0.0 }
 0x2a4   :  { %v773_v12 = vadd.f32 %v772_v7, %v771_v0  ;;  %v779_v13 = vrot.slane %v778_v11, 4 }
 0x2a5   :  { %v760_v14 = vrot.slane %v759_v9, 2  ;;  %v766_v15 = vadd.f32 %v765_v10, %v764_v8 }
 0x2a6   :  { %v774_v60 = vrot.slane %v773_v12, 2  ;;  %v780_v56 = vadd.f32 %v779_v13, %v778_v11 }
 0x2a7   :  { %v761_v57 = vadd.f32 %v760_v14, %v759_v9  ;;  %v767_v58 = vrot.slane %v766_v15, 2 }
 0x2a8   :  { %v775_v59 = vadd.f32 %v774_v60, %v773_v12  ;;  %v781_v16 = vrot.slane %v780_v56, 2 }
 0x2a9   :  { %v762_v17 = vrot.slane %v761_v57, 1  ;;  %v768_v18 = vadd.f32 %v767_v58, %v766_v15 }
 0x2aa   :  { %v776_v19 = vrot.slane %v775_v59, 1  ;;  %v782_v24 = vadd.f32 %v781_v16, %v780_v56 }
 0x2ab   :  { %v763_v25 = vadd.f32 %v762_v17, %v761_v57  ;;  %v769_v26 = vrot.slane %v768_v18, 1 }
 0x2ac   :  { %v777_v27 = vadd.f32 %v776_v19, %v775_v59  ;;  %v783_v48 = vrot.slane %v782_v24, 1 }
 0x2ad   :  { %855 = vrcp.f32 %v763_v25  ;;  %v770_v31 = vadd.f32 %v769_v26, %v768_v18 }
 0x2ae   :  { %857 = vrcp.f32 %v777_v27  ;;  %v784_v49 = vadd.f32 %v783_v48, %v782_v24 }
 0x2af   :  { %859 = vrcp.f32 %v770_v31 }
 0x2b0   :  { %861 = vrcp.f32 %v784_v49 }
 0x2b7   :  { %v856_v34 = vpop.eup %855 }
 0x2b8   :  { %v858_v50 = vpop.eup %857  ;;  %v786_v35 = vmul.f32 %v856_v34, %v848_v46 }
 0x2b9   :  { %v860_v51 = vpop.eup %859  ;;  %v790_v2 = vmul.f32 %v858_v50, %v850_v47 }
 0x2ba   :  { %v862_v4 = vpop.eup %861  ;;  %v788_v32 = vmul.f32 %v860_v51, %v852_v62 }
 0x2bb   :  { %v792_v1 = vmul.f32 %v862_v4, %v854_v6 }
 0x2bc   :  { %v797_v3 = vcombine.low %v786_v35, %v788_v32 }
 0x2bd   :  { %v798_v5 = vcombine.low %v790_v2, %v792_v1 }
 0x2be   :  { %801 = vst [vmem:[#allocation2] sm:$0xff] %v797_v3 }
 0x2bf   :  { %802 = vst [vmem:[#allocation2 + $0x8] sm:$0xff] %v798_v5 }
 0x2c0   :  { %807 = vsyncadd [#allocation3], 192  ;;  %s890_s5 = smov [#allocation2]  }
 0x2c1   :  { %s809_s19 = sshll.u32 %s890_s5, 4  ;;  %s810_s19 = int_to_ptr.vmem [resolvable:$true] %s809_s19 }
 0x2c2   :  { %s863_s20 = scalar_lea.vmem %s810_s19, 64  ;;  %s867_s21 = scalar_lea.vmem %s810_s19, 256 }
 0x2c3   :  { %p864_p0 = scmp.ne.s32.totalorder %s810_s19, %s863_s20  ;;  %p868_p1 = scmp.lt.s32.totalorder %s810_s19, %s810_s19 }
 0x2c4   :  { %p869_p2 = scmp.lt.s32.totalorder %s867_s21, %s863_s20 }
 0x2c6   :  { %p870_p3 = por %p869_p2, %p868_p1 }
 0x2c8   :  { %p871_p4 = pnand %p870_p3, %p864_p0 }
 0x2ca   :  { %874 = shalt.err (!%p871_p4)
}
 0x2cb   :  { %s875_s24 = scalar_lea.hbm %s1105_s7, 64 }
 0x2cc   :  { %p876_p5 = scmp.ne.s32.totalorder %s1105_s7, %s875_s24  ;;  %p879_p6 = scmp.lt.u32.totalorder %s875_s24, %s1105_s7 }
 0x2ce   :  { %p881_p7 = pnand %p879_p6, %p876_p5 }
 0x2d0   :  { %884 = shalt.err (!%p881_p7)
}
 0x2d1   :  { %812 = dma.vmem_to_hbm [thread:$0]  %s810_s19, 64, %s1105_s7, [#allocation3]  }
 0x2d2   :  { %885 = dma.done.wait [#allocation3], 256  }
 0x2d3   :  { %886 = vsyncadd [#allocation3], 4294967040 }
 0x2d4   :  { %816 = vsyncpa [#allocation3], 1 }

</bundles_post_ra>
